<compile_context>
chip_gen: v6e
topology: v6e:2x2x1
jax: 0.10.0
libtpu: 0.0.40
codegen_flags: <defaults>
</compile_context>

<pallas_src>
import jax
import jax.numpy as jnp
from jax.experimental import pallas as pl
from jax.experimental.pallas import tpu as pltpu


_TARGET_BLOCK_BYTES = 2 << 20       # ~2 MiB block: >=85% of HBM roofline, VMEM-safe
_SPLIT_THRESHOLD_BYTES = 2 << 20    # above this, force >= 4 blocks (v7x: 2 TCs)
_MAX_UNTILED_BLOCK_BYTES = 8 << 20  # safety valve for pathological ragged shapes


# ---------------------------------------------------------------------------
# Kernel (backward only): o = -lambda * g
# ---------------------------------------------------------------------------
def _neg_scale_kernel(lam_ref, g_ref, o_ref):
    # lambda comes from SMEM -> changing its value never recompiles the kernel.
    lam = lam_ref[0, 0]
    # Multiply in f32 so lambda is not quantized for low-precision grads
    # (the VALU has plenty of slack: this kernel is HBM-bound).
    o_ref[...] = (g_ref[...].astype(jnp.float32) * (-lam)).astype(o_ref.dtype)


def _sublane(dtype):
    itemsize = jnp.dtype(dtype).itemsize
    return 8 if itemsize >= 4 else (16 if itemsize == 2 else 32)


def _pick_block(dim, unit, budget):
    """Largest block <= budget that is a multiple of `unit`, or the full dim."""
    if budget >= dim:
        return dim
    b = max(unit, (budget // unit) * unit)
    return min(b, dim)


def _xla_neg_scale(g, lam):
    return (g.astype(jnp.float32) * (-lam.astype(jnp.float32))).astype(g.dtype)


def _pallas_neg_scale(g, lam):
    """dx = -lam * g via a streaming Pallas kernel (no pad/slice wrapper passes)."""
    orig_shape = g.shape
    dtype = g.dtype
    total = int(g.size)
    if total == 0:
        return g

    lam = jnp.asarray(lam, jnp.float32)
    itemsize = jnp.dtype(dtype).itemsize
    sub = _sublane(dtype)
    last = orig_shape[-1] if g.ndim >= 1 else 1

    # ---- choose a 2-D (rows, cols) view WITHOUT padding/copying the data ----
    if g.ndim >= 2 and last % 128 == 0:
        rows, cols = total // last, last           # lane-dense, free reshape
    elif total % 128 == 0:
        cols = 512 if total % 512 == 0 else (256 if total % 256 == 0 else 128)
        rows = total // cols                       # lane-dense fold of the flat grad
    elif g.ndim >= 2:
        rows, cols = total // last, last           # ragged last dim: masked edge lanes
    else:
        # TODO(synk): 0-D / ragged 1-D cotangents (never produced by this
        # module's feature-map inputs); plain XLA already hits the HBM roofline.
        return _xla_neg_scale(g, lam).reshape(orig_shape)

    total_bytes = total * itemsize

    # ---- block sizing: by bytes, not rows ----
    target = _TARGET_BLOCK_BYTES
    if total_bytes > _SPLIT_THRESHOLD_BYTES:
        # Cap blocks so the grid has >= ~4 entries -> both v7x TCs stream HBM.
        target = min(target, -(-total_bytes // 4))

    if cols % 128 == 0:
        bc = _pick_block(cols, 128, max(128, target // (sub * itemsize)))
    else:
        bc = cols                                  # non-tileable trailing dim: take it whole
    br = _pick_block(rows, sub, max(sub, target // (bc * itemsize)))

    # Safety valve: a non-lane-tileable trailing dim so large that even the
    # minimum block would blow VMEM.  Not reachable for real GRL feature maps.
    if bc * max(br, 1) * itemsize > _MAX_UNTILED_BLOCK_BYTES:
        return _xla_neg_scale(g, lam).reshape(orig_shape)

    g2d = g.reshape(rows, cols)
    lam2d = lam.reshape(1, 1)
    grid = (pl.cdiv(rows, br), pl.cdiv(cols, bc))

    out2d = pl.pallas_call(
        _neg_scale_kernel,
        out_shape=jax.ShapeDtypeStruct((rows, cols), dtype),
        grid=grid,
        in_specs=[
            pl.BlockSpec(memory_space=pltpu.MemorySpace.SMEM),   # lambda scalar
            pl.BlockSpec((br, bc), lambda i, j: (i, j)),
        ],
        out_specs=pl.BlockSpec((br, bc), lambda i, j: (i, j)),
        input_output_aliases={1: 0},   # pure overwrite: donate the cotangent buffer
        compiler_params=pltpu.CompilerParams(
            dimension_semantics=("parallel", "parallel"),
        ),
    )(lam2d, g2d)

    return out2d.reshape(orig_shape)


# ---------------------------------------------------------------------------
# GradientReversal as a custom_vjp.  lambda_ is a *traced* scalar (not a static
# nondiff arg), so changing it along a training schedule does not retrace or
# recompile; it receives a zero cotangent (matches `return (dx, None)` in torch).
# ---------------------------------------------------------------------------
@jax.custom_vjp
def gradient_reversal(x, lambda_):
    # Forward: identity.  No copy kernel needed (JAX is functional).
    return x


def _grl_fwd(x, lambda_):
    return x, lambda_


def _grl_bwd(lambda_, g):
    dx = _pallas_neg_scale(g, lambda_)
    return dx, jnp.zeros_like(lambda_)   # lambda_ gets no gradient


gradient_reversal.defvjp(_grl_fwd, _grl_bwd)


def gradient_reversal_fn(x, lambda_=1.0):
    return gradient_reversal(x, jnp.asarray(lambda_, jnp.float32))


class GradientReversal:
    """JAX/Pallas port of celldetr's GradientReversal module.

    Forward is the identity; backward multiplies the upstream gradient by
    -lambda_.  lambda_ may be overridden per call (e.g. a ramp schedule) and is
    fed to the kernel as a runtime SMEM scalar, so changing it never forces a
    Pallas recompile.
    """

    def __init__(self, lambda_=1):
        self.lambda_ = float(lambda_)

    def __call__(self, x, lambda_=None):
        lam = self.lambda_ if lambda_ is None else lambda_
        return gradient_reversal_fn(x, lam)


# ---------------------------------------------------------------------------
# Test
# ---------------------------------------------------------------------------
if __name__ == "__main__":
    key = jax.random.PRNGKey(0)
    lam = 0.5
    grl = GradientReversal(lambda_=lam)

    # --- small NCHW feature map, like the original module's typical input ---
    x = jax.random.normal(key, (2, 4, 16, 16), dtype=jnp.float32)

    # Forward: identity.
    y = jax.block_until_ready(grl(x))
    assert y.shape == x.shape and y.dtype == x.dtype
    assert jnp.allclose(y, x), "forward must be identity"

    # Backward: gradient of sum(y) w.r.t. x must be -lambda everywhere.
    gx = jax.block_until_ready(jax.grad(lambda v: jnp.sum(grl(v)))(x))
    assert jnp.allclose(gx, jnp.full_like(x, -lam)), "backward must be -lambda * grads"

    # lambda as a traced value under jit: same compiled kernel, different lambdas.
    @jax.jit
    def loss_grad(v, lam_val):
        return jax.grad(lambda u: jnp.sum(gradient_reversal_fn(u, lam_val)))(v)

    for lv in (0.1, 0.9):
        gxx = jax.block_until_ready(loss_grad(x, jnp.float32(lv)))
        assert jnp.allclose(gxx, jnp.full_like(x, -lv)), "traced-lambda backward mismatch"

    k1, k2, k3 = jax.random.split(key, 3)

    # --- lane-aligned trailing dim (free-reshape path), bf16 grads ---
    g_bf16 = jax.random.normal(k1, (2, 8, 256), dtype=jnp.float32).astype(jnp.bfloat16)
    out_bf16 = jax.block_until_ready(_pallas_neg_scale(g_bf16, lam))
    ref_bf16 = (g_bf16.astype(jnp.float32) * -lam).astype(jnp.bfloat16)
    assert out_bf16.dtype == jnp.bfloat16
    assert jnp.array_equal(out_bf16, ref_bf16), "bf16 backward mismatch"

    # --- larger (4 MiB) grad -> multi-block grid, lane-dense 512-wide fold ---
    g_big = jax.random.normal(k2, (4, 64, 64, 64), dtype=jnp.float32)
    out_big = jax.block_until_ready(_pallas_neg_scale(g_big, lam))
    assert jnp.allclose(out_big, -lam * g_big, atol=1e-6), "tiled backward mismatch (f32)"

    # --- ragged trailing dim / non-lane-aligned total -> masked edge lanes ---
    g_rag = jax.random.normal(k3, (37, 50), dtype=jnp.float32)
    out_rag = jax.block_until_ready(_pallas_neg_scale(g_rag, lam))
    assert jnp.allclose(out_rag, -lam * g_rag, atol=1e-6), "ragged backward mismatch"

    print("KERNEL_OK")
</pallas_src>

<mosaic_0001>
module attributes {stable_mosaic.version = 11 : i64} {
  func.func @_neg_scale_kernel(%arg0: i32, %arg1: i32, %arg2: memref<1x1xf32, #tpu.memory_space<smem>>, %arg3: memref<4x512xf32, #tpu.memory_space<vmem>>, %arg4: memref<4x512xf32, #tpu.memory_space<vmem>>) attributes {dimension_semantics = [#tpu.dimension_semantics<parallel>, #tpu.dimension_semantics<parallel>], iteration_bounds = array<i64: 1, 1>, scalar_prefetch = 0 : i64, scratch_operands = 0 : i64, tpu.core_type = #tpu.core_type<tc>, window_params = [{transform_indices = @transform_0, window_bounds = array<i64: 1, 1>}, {transform_indices = @transform_1, window_bounds = array<i64: 4, 512>}, {transform_indices = @transform_2, window_bounds = array<i64: 4, 512>}]} {
    %c0 = arith.constant 0 : index
    %c0_0 = arith.constant 0 : index
    %0 = memref.load %arg2[%c0, %c0_0] : memref<1x1xf32, #tpu.memory_space<smem>>
    %c0_1 = arith.constant 0 : index
    %c0_2 = arith.constant 0 : index
    %1 = vector.load %arg3[%c0_1, %c0_2] : memref<4x512xf32, #tpu.memory_space<vmem>>, vector<4x512xf32>
    %cst = arith.constant 0.000000e+00 : f32
    %2 = arith.subf %cst, %0 : f32
    %3 = vector.broadcast %2 : f32 to vector<4x512xf32>
    %4 = arith.mulf %1, %3 : vector<4x512xf32>
    %c0_3 = arith.constant 0 : index
    %c0_4 = arith.constant 0 : index
    %5 = vector.load %arg4[%c0_3, %c0_4] : memref<4x512xf32, #tpu.memory_space<vmem>>, vector<4x512xf32>
    tpu.vector_store %arg4[%c0_3, %c0_4], %4 {strides = array<i32>} : memref<4x512xf32, #tpu.memory_space<vmem>>, vector<4x512xf32>,
    return
  }
  func.func @transform_0(%arg0: i32, %arg1: i32) -> (i32, i32) {
    %c0_i32 = arith.constant 0 : i32
    %c0_i32_0 = arith.constant 0 : i32
    %c0_i32_1 = arith.constant 0 : i32
    return %c0_i32, %c0_i32_0 : i32, i32
  }
  func.func @transform_1(%arg0: i32, %arg1: i32) -> (i32, i32) {
    %c0_i32 = arith.constant 0 : i32
    return %arg0, %arg1 : i32, i32
  }
  func.func @transform_2(%arg0: i32, %arg1: i32) -> (i32, i32) {
    %c0_i32 = arith.constant 0 : i32
    return %arg0, %arg1 : i32, i32
  }
}

</mosaic_0001>

<bundles_post_ra>
// kernel: tpu_custom_call.1
= control target key start
LH: loop header
LB: loop body
LE: loop exit
PB: predicated region body
PF: predicated region fallthrough
CT: control target
= control target key end

     0   :  { %8 = vsyncpa [#allocation4], 0  ;;  %s121_s0 = inlined_call_operand.<no memory space> [shape: f32[1,1], index: 0, kind: input, shape index: {}]   ;;  %s122_s1 = inlined_call_operand.hbm [shape: f32[4,512], index: 1, kind: input, shape index: {}, may-alias: {1,2}]   ;;  %s123_s2 = inlined_call_operand.hbm [shape: f32[4,512], index: 2, kind: output, shape index: {}, may-alias: {1,2}]  }
   0x1   :  { %9 = vsyncpa [#allocation5], 0  ;;  %s95_s9 = smov [#allocation3]  }
   0x2   :  { %s18_s10 = sshll.u32 %s95_s9, 4  ;;  %s19_s10 = int_to_ptr.vmem [resolvable:$true] %s18_s10 }
   0x3   :  { %s59_s11 = scalar_lea.vmem %s19_s10, 256  ;;  %p64_p1 = scmp.lt.s32.totalorder %s19_s10, %s19_s10 }
   0x4   :  { %p60_p0 = scmp.ne.s32.totalorder %s19_s10, %s59_s11  ;;  %p65_p2 = scmp.lt.s32.totalorder %s59_s11, %s59_s11 }
   0x6   :  { %p66_p3 = por %p65_p2, %p64_p1 }
   0x8   :  { %p67_p4 = pnand %p66_p3, %p60_p0 }
   0xa   :  { %70 = shalt.err (!%p67_p4)
}
   0xb   :  { %21 = dma.hbm_to_vmem [thread:$0]  %s122_s1, 256, %s19_s10, [#allocation4]  }
   0xc   :  { %91 = dma.done.wait [#allocation4], 256  }
   0xd   :  { %92 = vsyncadd [#allocation4], 4294967040  ;;  %s28_s16 = ssub.f32 0.0, %s121_s0  ;;  %s96_s17 = smov [#allocation6]   ;;  %v26_v1 = vld [vmem:[#allocation3] sm:$0xff]  ;;  %v27_v2 = vld [vmem:[#allocation3 + $0x8] sm:$0xff] }
   0xe   :  { %s40_s18 = sshll.u32 %s96_s17, 4  ;;  %s41_s18 = int_to_ptr.vmem [resolvable:$true] %s40_s18 }
   0xf   :  { %v29_v0 = vstv %s28_s16  ;;  %s71_s19 = scalar_lea.vmem %s41_s18, 256  ;;  %p76_p6 = scmp.lt.s32.totalorder %s41_s18, %s41_s18 }
  0x10   :  { %v30_v3 = vmul.f32 %v29_v0, %v26_v1  ;;  %v31_v4 = vmul.f32 %v29_v0, %v27_v2  ;;  %p72_p5 = scmp.ne.s32.totalorder %s41_s18, %s71_s19  ;;  %p77_p7 = scmp.lt.s32.totalorder %s71_s19, %s71_s19 }
  0x12   :  { %32 = vst [vmem:[#allocation6] sm:$0xff] %v30_v3  ;;  %33 = vst [vmem:[#allocation6 + $0x8] sm:$0xff] %v31_v4  ;;  %p78_p8 = por %p77_p7, %p76_p6 }
  0x14   :  { %p79_p9 = pnand %p78_p8, %p72_p5 }
  0x16   :  { %82 = shalt.err (!%p79_p9)
}
  0x17   :  { %43 = dma.vmem_to_hbm [thread:$0]  %s41_s18, 256, %s123_s2, [#allocation5]  }
  0x18   :  { %93 = dma.done.wait [#allocation5], 256  }
  0x19   :  { %94 = vsyncadd [#allocation5], 4294967040 }
  0x1a   :  { %47 = vsyncpa [#allocation4], 1 }
  0x1b   :  { %48 = vsyncpa [#allocation5], 1 }

</bundles_post_ra>
